<compile_context>
chip_gen: v7x
topology: tpu7x:2x2x1
jax: 0.10.0
libtpu: 0.0.40
codegen_flags: <defaults>
</compile_context>

<pallas_src>
import jax
import jax.numpy as jnp
from jax.experimental import pallas as pl
from jax.experimental.pallas import tpu as pltpu


# ----------------------------------------------------------------------------
# Pallas kernel: z_tile = W @ x_tile  for one (batch, L-tile) grid step
# ----------------------------------------------------------------------------
def _conv1x1_kernel(w_ref, x_ref, z_ref):
    # w_ref: (C, C), x_ref: (C, TL), z_ref: (C, TL).  MXU matmul, f32 accum.
    z_ref[...] = jnp.dot(
        w_ref[...], x_ref[...], preferred_element_type=jnp.float32
    ).astype(z_ref.dtype)


def conv1x1_pallas(x, weight, *, tile_l=1024):
    """1x1 convolution: x (B, C, L), weight (C, C) -> (B, C, L)."""
    B, C, L = x.shape
    out_dtype = x.dtype
    itemsize = jnp.dtype(x.dtype).itemsize

    # Lane-dense tile along L: a multiple of 128, clamped so one tile covers
    # short sequences.
    TL = max(128, (int(tile_l) // 128) * 128)
    TL = min(TL, pl.cdiv(L, 128) * 128)
    n_l = pl.cdiv(L, TL)

    # Match operand dtypes for the MXU (tiny C x C cast, negligible).
    w = weight.astype(x.dtype)

    # Double-buffered x + z tiles, resident (double-buffered) weight, slack.
    vmem_needed = 2 * C * TL * itemsize * 2 + 2 * C * C * itemsize
    vmem_limit = int(min(96 << 20, max(32 << 20, vmem_needed + (4 << 20))))

    cost = pl.CostEstimate(
        flops=2 * B * C * C * L,
        transcendentals=0,
        bytes_accessed=2 * B * C * L * itemsize + C * C * itemsize,
    )

    return pl.pallas_call(
        _conv1x1_kernel,
        out_shape=jax.ShapeDtypeStruct((B, C, L), out_dtype),
        grid=(B, n_l),
        in_specs=[
            pl.BlockSpec((C, C), lambda b, l: (0, 0)),            # W (resident)
            pl.BlockSpec((None, C, TL), lambda b, l: (b, 0, l)),  # x[b] L-tile
        ],
        out_specs=pl.BlockSpec((None, C, TL), lambda b, l: (b, 0, l)),
        compiler_params=pltpu.CompilerParams(
            dimension_semantics=("parallel", "parallel"),
            vmem_limit_bytes=vmem_limit,
        ),
        cost_estimate=cost,
    )(w, x)


# ----------------------------------------------------------------------------
# Module-equivalent parameter construction + forward
# ----------------------------------------------------------------------------
class InvertibleConv1x1:
    def __init__(self, num_channels, LU_decomposed, key, tile_l=1024):
        w_shape = (num_channels, num_channels)
        # Deterministic init: QR of a random normal matrix (as in the module).
        w_init = jnp.linalg.qr(jax.random.normal(key, w_shape, jnp.float32))[0]
        self.w_shape = w_shape
        self.LU_decomposed = LU_decomposed
        self.tile_l = tile_l
        if not LU_decomposed:
            self.weight = w_init
        else:
            # LU decomposition with partial pivoting: w_init = P @ L @ U
            p, lower, upper = jax.scipy.linalg.lu(w_init)
            s = jnp.diag(upper)
            self.p = p
            self.sign_s = jnp.sign(s)
            self.log_s = jnp.log(jnp.abs(s))
            self.lower = lower
            self.upper = jnp.triu(upper, 1)
            self.l_mask = jnp.tril(jnp.ones(w_shape, jnp.float32), -1)
            self.eye = jnp.eye(num_channels, dtype=jnp.float32)

    def get_weight(self, x, reverse):
        b, c, L = x.shape
        if not self.LU_decomposed:
            dlogdet = jnp.linalg.slogdet(self.weight)[1] * L
            weight = jnp.linalg.inv(self.weight) if reverse else self.weight
        else:
            lower = self.lower * self.l_mask + self.eye
            u = self.upper * self.l_mask.T
            u = u + jnp.diag(self.sign_s * jnp.exp(self.log_s))
            dlogdet = jnp.sum(self.log_s) * L
            if reverse:
                u_inv = jnp.linalg.inv(u)
                l_inv = jnp.linalg.inv(lower)
                p_inv = self.p.T          # permutation: inverse == transpose
                weight = u_inv @ (l_inv @ p_inv)
            else:
                weight = self.p @ (lower @ u)
        return weight, dlogdet

    def forward(self, x, logdet=None, reverse=False):
        weight, dlogdet = self.get_weight(x, reverse)
        z = conv1x1_pallas(x, weight, tile_l=self.tile_l)   # hot path in Pallas
        if logdet is not None:
            logdet = logdet - dlogdet if reverse else logdet + dlogdet
        return z, logdet


# ----------------------------------------------------------------------------
# Demo / sanity check
# ----------------------------------------------------------------------------
if __name__ == "__main__":
    key = jax.random.PRNGKey(0)
    k_w, k_x = jax.random.split(key)

    B, C, L = 2, 8, 200          # L deliberately not a multiple of 128
    x = jax.random.normal(k_x, (B, C, L), jnp.float32)
    logdet0 = jnp.zeros((B,), jnp.float32)

    # --- LU-decomposed variant (forward + reverse round-trip) ---------------
    mod = InvertibleConv1x1(num_channels=C, LU_decomposed=True, key=k_w)

    z, logdet = mod.forward(x, logdet=logdet0, reverse=False)
    z = jax.block_until_ready(z)
    logdet = jax.block_until_ready(logdet)

    # Reference check of the Pallas conv against a plain-XLA einsum.
    w_fwd, _ = mod.get_weight(x, reverse=False)
    z_ref = jnp.einsum("oc,bcl->bol", w_fwd, x)
    assert jnp.allclose(z, z_ref, atol=5e-2, rtol=5e-2)

    # Reverse pass should invert the forward pass.
    x_rec, logdet_rec = mod.forward(z, logdet=logdet, reverse=True)
    x_rec = jax.block_until_ready(x_rec)
    assert jnp.allclose(x_rec, x, atol=5e-2, rtol=5e-2)
    assert jnp.allclose(logdet_rec, logdet0, atol=1e-3)

    # --- Non-LU variant (exercise the other weight path) --------------------
    mod2 = InvertibleConv1x1(num_channels=C, LU_decomposed=False, key=k_w)
    z2, _ = mod2.forward(x, logdet=logdet0, reverse=False)
    z2 = jax.block_until_ready(z2)
    z2_ref = jnp.einsum("oc,bcl->bol", mod2.weight, x)
    assert jnp.allclose(z2, z2_ref, atol=5e-2, rtol=5e-2)

    print("KERNEL_OK")
</pallas_src>

<mosaic_0001>
module attributes {stable_mosaic.version = 11 : i64} {
  func.func @_conv1x1_kernel(%arg0: i32, %arg1: i32, %arg2: memref<8x8xf32, #tpu.memory_space<vmem>>, %arg3: memref<1x8x256xf32, #tpu.memory_space<vmem>>, %arg4: memref<1x8x256xf32, #tpu.memory_space<vmem>>) attributes {dimension_semantics = [#tpu.dimension_semantics<parallel>, #tpu.dimension_semantics<parallel>], iteration_bounds = array<i64: 2, 1>, scalar_prefetch = 0 : i64, scratch_operands = 0 : i64, tpu.core_type = #tpu.core_type<tc>, window_params = [{pipeline_mode = #tpu.pipeline_mode<synchronous>, transform_indices = @transform_0, window_bounds = array<i64: 8, 8>}, {transform_indices = @transform_1, window_bounds = array<i64: 1, 8, 256>}, {transform_indices = @transform_2, window_bounds = array<i64: 1, 8, 256>}]} {
    %c0 = arith.constant 0 : index
    %c0_0 = arith.constant 0 : index
    %0 = vector.load %arg2[%c0, %c0_0] : memref<8x8xf32, #tpu.memory_space<vmem>>, vector<8x8xf32>
    %c0_1 = arith.constant 0 : index
    %c0_2 = arith.constant 0 : index
    %c0_3 = arith.constant 0 : index
    %1 = vector.load %arg3[%c0_1, %c0_2, %c0_3] : memref<1x8x256xf32, #tpu.memory_space<vmem>>, vector<1x8x256xf32>
    %2 = vector.shape_cast %1 : vector<1x8x256xf32> to vector<8x256xf32>
    %cst = arith.constant dense<0.000000e+00> : vector<8x256xf32>
    %3 = tpu.matmul %0, %2, %cst {dimension_numbers = #tpu.dot_dimension_numbers<[1], [0], [0], [1], [0, 0, 1, 1], [], []>} : vector<8x8xf32>, vector<8x256xf32>, vector<8x256xf32> -> vector<8x256xf32>
    %c0_4 = arith.constant 0 : index
    %c0_5 = arith.constant 0 : index
    %c0_6 = arith.constant 0 : index
    %4 = vector.load %arg4[%c0_4, %c0_5, %c0_6] : memref<1x8x256xf32, #tpu.memory_space<vmem>>, vector<1x8x256xf32>
    %5 = vector.shape_cast %4 : vector<1x8x256xf32> to vector<8x256xf32>
    %6 = vector.shape_cast %3 : vector<8x256xf32> to vector<1x8x256xf32>
    tpu.vector_store %arg4[%c0_4, %c0_5, %c0_6], %6 {strides = array<i32>} : memref<1x8x256xf32, #tpu.memory_space<vmem>>, vector<1x8x256xf32>,
    return
  }
  func.func @transform_0(%arg0: i32, %arg1: i32) -> (i32, i32) {
    %c0_i32 = arith.constant 0 : i32
    %c0_i32_0 = arith.constant 0 : i32
    %c0_i32_1 = arith.constant 0 : i32
    return %c0_i32, %c0_i32_0 : i32, i32
  }
  func.func @transform_1(%arg0: i32, %arg1: i32) -> (i32, i32, i32) {
    %c0_i32 = arith.constant 0 : i32
    %c0_i32_0 = arith.constant 0 : i32
    return %arg0, %c0_i32, %arg1 : i32, i32, i32
  }
  func.func @transform_2(%arg0: i32, %arg1: i32) -> (i32, i32, i32) {
    %c0_i32 = arith.constant 0 : i32
    %c0_i32_0 = arith.constant 0 : i32
    return %arg0, %c0_i32, %arg1 : i32, i32, i32
  }
}

</mosaic_0001>

<bundles_post_ra>
// kernel: tpu_custom_call.1
= control target key start
LH: loop header
LB: loop body
LE: loop exit
PB: predicated region body
PF: predicated region fallthrough
CT: control target
= control target key end

     0   :  { %7 = vsyncpa [#allocation3], 0  ;;  %s861_s0 = inlined_call_operand.hbm [shape: f32[8,8], index: 0, kind: input, shape index: {}]   ;;  %s862_s1 = inlined_call_operand.hbm [shape: f32[2,8,200], index: 1, kind: input, shape index: {}]   ;;  %s863_s2 = inlined_call_operand.hbm [shape: f32[2,8,200], index: 2, kind: output, shape index: {}]  }
   0x1   :  { %8 = vsyncpa [#allocation6], 0 }
   0x2   :  { %10 = vsyncpa [#allocation6 + $0x1], 0 }
   0x3   :  { %11 = vsyncpa [#allocation4], 0 }
   0x4   :  { %13 = vsyncpa [#allocation4 + $0x1], 0  ;;  %s645_s9 = smov 0   ;;  %s647_s10 = smov 0  }
   0x5   :  { %s649_s11 = smov 0   ;;  %s651_s12 = smov 0  }
   0x6   :  { %s653_s13 = smov 0   ;;  %s655_s14 = smov 0  }
   0x7 LB: > { %s386_s15 = sadd.s32 4294967295, %s624_s14   ;;  %s387_s16 = sadd.s32 4294967294, %s624_s14   ;;  %s624_s14 = sphi %s655_s14, %s19_s14   ;;  %s620_s13 = sphi %s653_s13, %s888_s13   ;;  %s616_s12 = sphi %s651_s12, %s887_s12   ;;  %s612_s11 = sphi %s649_s11, %s886_s11   ;;  %s608_s10 = sphi %s647_s10, %s885_s10   ;;  %s604_s9 = sphi %s645_s9, %s884_s9  }
   0x8   : > { %p74_p0 = scmp.ne.s32.totalorder %s608_s10, %s604_s9  ;;  %p679_p1 = scmp.eq.s32.totalorder %s386_s15, 0 }
   0x9   : > { %p683_p2 = scmp.eq.s32.totalorder %s386_s15, 1  ;;  %p106_p3 = scmp.eq.s32.totalorder %s387_s16, 1 }
   0xa   : > { %s868_s17 = scalar_select %p679_p1, 1, 0 }
   0xb   : > { %s869_s18 = scalar_select %p683_p2, 1, 0 }
   0xc   : > { %p689_p4 = por %p679_p1, %p74_p0  ;;  %p388_p5 = scmp.ge.s32.totalorder %s624_s14, 1 }
   0xd   : > { %p694_p6 = por %p106_p3, %p74_p0  ;;  %p113_p7 = scmp.lt.s32.totalorder %s624_s14, 3 }
   0xe   : > { %s870_s19 = scalar_select %p689_p4, 1, 0 }
   0xf   : > { %s871_s20 = scalar_select %p694_p6, 1, 0 }
  0x10   : > { %p699_p8 = pnand %p388_p5, %p113_p7  ;;  %s626_s22 = smov [#allocation2]  }
  0x11   : > { %s126_s23 = sshll.u32 %s626_s22, 4  ;;  %s31_s25 = sadd.s32 1, %s620_s13  ;;  %s127_s23 = int_to_ptr.vmem [resolvable:$true] %s126_s23 }
  0x12   : > { %s872_s21 = scalar_select %p699_p8, 1, 0 }
  0x13   : > { %p414_p10 = pneg %p699_p8  ;;  %s61_s26 = sadd.s32 1, %s612_s11 }
  0x14   : > { %p714_p12 = scmp.ge.s32.totalorder %s31_s25, 2  ;;  %s480_s30 = scalar_lea.hbm %s861_s0, 128 }
  0x15   : > { %p708_p11 = pnand %p414_p10, %p679_p1  ;;  %p481_p13 = scmp.ne.s32.totalorder %s861_s0, %s480_s30 }
  0x16   : > { %s874_s27 = scalar_select %p714_p12, 1, 0 }
  0x17   : > { %p482_p0 = pneg %p708_p11  ;;  %p487_p7 = scmp.lt.u32.totalorder %s480_s30, %s861_s0 }
  0x19   : > { %p483_p3 = pnand %p482_p0, %p481_p13 }
  0x1b   : > { %p484_p5 = pneg %p483_p3 }
  0x1d   : > { %p489_p10 = pnand %p487_p7, %p484_p5 }
  0x1f   : > { %492 = shalt.err (!%p489_p10)
}
  0x20   : > { %s493_s7 = scalar_lea.vmem %s127_s23, 128  ;;  %p501_p1 = scmp.lt.s32.totalorder %s127_s23, %s127_s23 }
  0x21   : > { %p494_p9 = scmp.ne.s32.totalorder %s127_s23, %s493_s7  ;;  %p502_p8 = scmp.lt.s32.totalorder %s493_s7, %s493_s7 }
  0x23   : > { %p496_p6 = pnand %p494_p9, %p482_p0  ;;  %p503_p2 = por %p502_p8, %p501_p1 }
  0x25   : > { %p497_p4 = pneg %p496_p6 }
  0x27   : > { %p504_p12 = pnand %p503_p2, %p497_p4 }
  0x29   : > { %507 = shalt.err (!%p504_p12)
}
  0x2a   : > { %417 = dma.hbm_to_vmem [thread:$0]  (!%p708_p11), %s861_s0, 128, %s127_s23, [#allocation3]  }
  0x2b   : > { %p875_p1 = scmp.ne.s32.totalorder %s874_s27, 0  ;;  %p68_p2 = scmp.ne.s32.totalorder %s612_s11, %s608_s10 }
  0x2c   : > { %p69_p4 = scmp.eq.s32.totalorder %s624_s14, 0  ;;  %p427_p6 = scmp.lt.s32.totalorder %s624_s14, 2 }
  0x2d   : > { %s890_s25 = smov (%p875_p1, %s31_s25), 0  ;;  %p876_p12 = scmp.ne.s32.totalorder %s869_s18, 0 }
  0x2e   : > { %s56_s16 = ssub.s32 %s620_s13, %s890_s25  ;;  %p70_p9 = por %p69_p4, %p68_p2 }
  0x2f   : > { %p59_p8 = scmp.eq.s32.totalorder %s56_s16, 0  ;;  %p746_p13 = por %p876_p12, %p68_p2 }
  0x30   : > { %s137_s24 = sand.u32 1, %s612_s11   ;;  %s404_s27 = sshll.u32 %s620_s13, 8 }
  0x31   : > { %s754_s28 = scalar_select %p59_p8, %s612_s11, %s61_s26  }
  0x32   : > { %s391_s23 = sshll.u32 %s137_s24, 4  ;;  %s760_s3 = scalar_lea.hbm %s862_s1, %s404_s27 }
  0x33   : > { %s141_s18 = scalar_lea.vmem [#allocation5], %s391_s23  ;;  %p764_p11 = pnand %p427_p6, %p70_p9 }
  0x34   : > { %s151_s4 = sshll.u32 %s141_s18, 4  ;;  %s138_s26 = scalar_lea.sflag [#allocation6], %s137_s24  ;;  %s762_s4 = int_to_ptr.vmem [resolvable:$true] %s151_s4 }
  0x35   : > { %s508_s6 = scalar_lea.hbm %s760_s3, 256  ;;  %p510_p3 = pneg %p764_p11 }
  0x36   : > { %p509_p0 = scmp.ne.s32.totalorder %s760_s3, %s508_s6  ;;  %s513_s15 = scalar_lea.hbm %s862_s1, 512 }
  0x37   : > { %p514_p10 = scmp.lt.u32.totalorder %s760_s3, %s862_s1  ;;  %p515_p1 = scmp.lt.u32.totalorder %s513_s15, %s508_s6 }
  0x38   : > { %p511_p5 = pnand %p510_p3, %p509_p0  ;;  %p517_p4 = scmp.lt.u32.totalorder %s508_s6, %s760_s3 }
  0x39   : > { %p516_p2 = por %p515_p1, %p514_p10 }
  0x3a   : > { %p512_p7 = pneg %p511_p5 }
  0x3b   : > { %p518_p6 = por %p517_p4, %p516_p2 }
  0x3d   : > { %p519_p8 = pnand %p518_p6, %p512_p7 }
  0x3f   : > { %522 = shalt.err (!%p519_p8)
}
  0x40   : > { %s523_s24 = scalar_lea.vmem %s762_s4, 256  ;;  %s627_s27 = smov [#allocation5]  }
  0x41   : > { %p524_p9 = scmp.ne.s32.totalorder %s762_s4, %s523_s24  ;;  %s528_s29 = sshll.u32 %s627_s27, 4  ;;  %s529_s29 = int_to_ptr.vmem [resolvable:$false] %s528_s29 }
  0x42   : > { %s530_s30 = scalar_lea.vmem %s529_s29, 512  ;;  %p531_p5 = scmp.lt.s32.totalorder %s762_s4, %s529_s29 }
  0x43   : > { %p526_p12 = pnand %p524_p9, %p510_p3  ;;  %p532_p10 = scmp.lt.s32.totalorder %s530_s30, %s523_s24 }
  0x45   : > { %p527_p0 = pneg %p526_p12  ;;  %p533_p1 = por %p532_p10, %p531_p5 }
  0x47   : > { %p534_p2 = pnand %p533_p1, %p527_p0 }
  0x49   : > { %537 = shalt.err (!%p534_p2)
}
  0x4a   : > { %421 = dma.hbm_to_vmem [thread:$0]  (!%p764_p11), %s760_s3, 256, %s762_s4, %s138_s26  }
  0x4b   : > { %p879_p7 = scmp.ne.s32.totalorder %s872_s21, 0 }
  0x4c   : > { %p880_p3 = scmp.ne.s32.totalorder (!%p879_p7), %s868_s17, 0 }
  0x4d   : > { %160 = sbr.rel (%p879_p7) target bundleno = 319 (0x13f), region = 28 }
  0x54   : > { %591 = dma.done.wait (%p880_p3), [#allocation3], 128  }
  0x55   : > { %593 = vsyncadd (%p880_p3), [#allocation3], 4294967168  ;;  %s800_s18 = sand.u32 1, %s608_s10   ;;  %p881_p4 = scmp.ne.s32.totalorder %s870_s19, 0 }
  0x56   : > { %s396_s6 = sshll.u32 %s800_s18, 4  ;;  %s167_s5 = scalar_lea.sflag [#allocation6], %s800_s18 }
  0x57   : > { %s170_s7 = scalar_lea.vmem [#allocation5], %s396_s6 }
  0x58   : > { %595 = dma.done.wait (%p881_p4), %s167_s5, 256  }
  0x59   : > { %597 = vsyncadd (%p881_p4), %s167_s5, 4294967040  ;;  %v628_v0 = vmov 0.0   ;;  %v195_v1 = vld [vmem:[%s170_s7 + $0x8] sm:$0xff]  ;;  %v194_v2 = vld [vmem:[%s170_s7] sm:$0xff]  ;;  %vm196_vm0 = vcmask 64512   ;;  %s190_s17 = scalar_lea.vmem [#allocation7], %s396_s6 }
  0x5a   : > { %264 = vmatprep.mubr.f32.mxu0 %v628_v0  ;;  %v193_v3 = vld [vmem:[#allocation2] sm:$0xff]  ;;  %200 = vmatprep.subr.mxu0 %v195_v1  ;;  %s290_s21 = sshll.u32 %s190_s17, 4  ;;  %s405_s3 = sshll.u32 %s616_s12, 8  ;;  %s809_s21 = int_to_ptr.vmem [resolvable:$true] %s290_s21 }
  0x5b   : > { %201 = vmatpush1.msra.mxu0 %v194_v2  ;;  %s814_s26 = scalar_lea.hbm %s863_s2, %s405_s3  ;;  %s274_s8 = scalar_lea.sflag [#allocation4], %s800_s18 }
  0x5c   : > { %398 = vmatmul.mubr.msk.f32.vlgmr.msra.gmra.mrb[0].mxu0 %vm196_vm0, %v193_v3  ;;  %s538_s15 = scalar_lea.vmem %s809_s21, 256  ;;  %s629_s12 = smov [#allocation7]  }
  0x5d   : > { %p539_p11 = scmp.ne.s32.totalorder %s809_s21, %s538_s15  ;;  %s542_s16 = sshll.u32 %s629_s12, 4  ;;  %s543_s16 = int_to_ptr.vmem [resolvable:$false] %s542_s16 }
  0x5e   : > { %s544_s23 = scalar_lea.vmem %s543_s16, 512  ;;  %p545_p9 = scmp.lt.s32.totalorder %s809_s21, %s543_s16 }
  0x5f   : > { %p540_p6 = pnand %p539_p11, %p746_p13  ;;  %p546_p12 = scmp.lt.s32.totalorder %s544_s23, %s538_s15 }
  0x61   : > { %p541_p8 = pneg %p540_p6  ;;  %p547_p0 = por %p546_p12, %p545_p9 }
  0x63   : > { %p548_p5 = pnand %p547_p0, %p541_p8 }
 0x12f   : > { %v266_v4 = vpop.f32.mrb[0].mxu0 }
 0x130   : > { %271 = vst [vmem:[%s190_s17] sm:$0xff] %v266_v4  ;;  %v268_v5 = vpop.f32.mrb[1].mxu0 }
 0x131   : > { %272 = vst [vmem:[%s190_s17 + $0x8] sm:$0xff] %v268_v5 }
 0x132   : > { %551 = shalt.err (!%p548_p5)
}
 0x133   : > { %s552_s24 = scalar_lea.hbm %s814_s26, 256  ;;  %s556_s30 = scalar_lea.hbm %s863_s2, 512 }
 0x134   : > { %p553_p10 = scmp.ne.s32.totalorder %s814_s26, %s552_s24  ;;  %p557_p7 = scmp.lt.u32.totalorder %s814_s26, %s863_s2 }
 0x135   : > { %p558_p3 = scmp.lt.u32.totalorder %s556_s30, %s552_s24  ;;  %p560_p11 = scmp.lt.u32.totalorder %s552_s24, %s814_s26 }
 0x136   : > { %p554_p1 = pnand %p553_p10, %p746_p13 }
 0x137   : > { %p559_p4 = por %p558_p3, %p557_p7 }
 0x138   : > { %p555_p2 = pneg %p554_p1 }
 0x139   : > { %p561_p6 = por %p560_p11, %p559_p4 }
 0x13b   : > { %p562_p8 = pnand %p561_p6, %p555_p2 }
 0x13d   : > { %565 = shalt.err (!%p562_p8)
}
 0x13e   : > { %412 = dma.vmem_to_hbm [thread:$0]  (%p746_p13), %s809_s21, 256, %s814_s26, %s274_s8  }
 0x13f PF: > { %s302_s5 = sand.u32 1, %s604_s9   ;;  %p882_p9 = scmp.ne.s32.totalorder %s871_s20, 0 }
 0x140   : > { %p883_p12 = scmp.ge.s32.totalorder %s624_s14, 2  ;;  %s303_s7 = scalar_lea.sflag [#allocation4], %s302_s5 }
 0x142   : > { %p423_p0 = pnand %p883_p12, %p882_p9 }
 0x144   : > { %599 = dma.done.wait (!%p423_p0), %s303_s7, 256  }
 0x145   : > { %601 = vsyncadd (!%p423_p0), %s303_s7, 4294967040  ;;  %s19_s14 = sadd.s32 1, %s624_s14   ;;  %s884_s9 = smov %s608_s10 }
 0x146   : > { %p16_p5 = scmp.ge.s32.totalorder %s19_s14, 4   ;;  %s885_s10 = smov %s612_s11 }
 0x147   : > { %s886_s11 = smov %s754_s28  ;;  %s887_s12 = smov %s620_s13 }
 0x148   : > { %s888_s13 = smov %s890_s25  ;;  %18 = sbr.rel (!%p16_p5) target bundleno = 7 (0x7), region = 78 }
 0x14f   :  { %308 = vsyncpa [#allocation3], 1 }
 0x150   :  { %310 = vsyncpa [#allocation3 + $0x1], 1 }
 0x151   :  { %311 = vsyncpa [#allocation6], 1 }
 0x152   :  { %313 = vsyncpa [#allocation6 + $0x1], 1 }
 0x153   :  { %314 = vsyncpa [#allocation4], 1 }
 0x154   :  { %316 = vsyncpa [#allocation4 + $0x1], 1 }

</bundles_post_ra>
